<compile_context>
chip_gen: v6e
topology: v6e:2x2x1
jax: 0.10.0
libtpu: 0.0.40
codegen_flags: <defaults>
</compile_context>

<pallas_src>
import functools

import jax
import jax.numpy as jnp
from jax.experimental import pallas as pl
from jax.experimental.pallas import tpu as pltpu


def _round_up(x, m):
    return ((x + m - 1) // m) * m


# --------------------- kernel 1: seq_fts = seq @ W^T -------------------------
def _fts_kernel(seq_ref, wt_ref, fts_ref):
    # (TM, in_pad) @ (in_pad, F_pad) -> (TM, F_pad), f32 accumulate on MXU.
    fts_ref[...] = jnp.dot(
        seq_ref[...], wt_ref[...], preferred_element_type=jnp.float32
    ).astype(fts_ref.dtype)


# ------------- kernel 2: out = PReLU(adj @ seq_fts + bias) -------------------
def _agg_kernel(adj_ref, fts_ref, bias_ref, alpha_ref, out_ref, acc_ref, *, tk):
    k = pl.program_id(1)

    @pl.when(k == 0)
    def _init():
        acc_ref[...] = jnp.zeros_like(acc_ref)

    # adj tile (TM, TK) x resident seq_fts slice (TK, F_pad); f32 accumulation.
    off = pl.multiple_of(k * tk, tk)
    acc_ref[...] += jnp.dot(
        adj_ref[...],
        fts_ref[pl.ds(off, tk), :],
        preferred_element_type=jnp.float32,
    )

    # Epilogue (bias + PReLU) only on the last reduction step, single
    # lane-dense store of the f32 result.
    @pl.when(k == pl.num_programs(1) - 1)
    def _finalize():
        h = acc_ref[...] + bias_ref[...]                 # (TM,F) + (1,F)
        out_ref[...] = jnp.where(h > 0.0, h, h * alpha_ref[...]).astype(out_ref.dtype)


def gcn_forward(seq, adj, weight, bias, alpha, *, compute_dtype=jnp.bfloat16):
    """seq: (N,in_ft) or (1,N,in_ft); adj: (N,N) or (1,N,N). Returns (1,N,out_ft) f32."""
    if seq.ndim == 3 and seq.shape[0] == 1:
        seq = seq[0]
    if adj.ndim == 3 and adj.shape[0] == 1:
        adj = adj[0]
    N, in_ft = seq.shape
    out_ft = weight.shape[0]

    # ---- lane/sublane aligned padding + tile selection ----
    TILE = 256                              # fits v7x 64 MiB VMEM comfortably
    N_pad = _round_up(N, 128)
    if N_pad > TILE:
        N_pad = _round_up(N, TILE)
        TM = TK = TILE
    else:
        TM = TK = N_pad
    in_pad = _round_up(in_ft, 128)
    f_pad = _round_up(out_ft, 128)

    # ---- pad + cast (bf16 inputs, f32 accumulation; bias/alpha stay f32) ----
    seq_p = jnp.zeros((N_pad, in_pad), compute_dtype).at[:N, :in_ft].set(
        seq.astype(compute_dtype))
    adj_p = jnp.zeros((N_pad, N_pad), compute_dtype).at[:N, :N].set(
        adj.astype(compute_dtype))
    # pre-transpose W on the host: (out_ft, in_ft) -> (in_pad, f_pad)
    wt_p = jnp.zeros((in_pad, f_pad), compute_dtype).at[:in_ft, :out_ft].set(
        weight.T.astype(compute_dtype))
    bias_p = jnp.zeros((1, f_pad), jnp.float32).at[0, :out_ft].set(
        bias.astype(jnp.float32))
    alpha_p = jnp.asarray(alpha, jnp.float32).reshape(1, 1)

    n_rows = N_pad // TM
    n_k = N_pad // TK

    # ---------------- pass 1: seq_fts (computed once, lane-dense) ------------
    fts = pl.pallas_call(
        _fts_kernel,
        out_shape=jax.ShapeDtypeStruct((N_pad, f_pad), compute_dtype),
        grid_spec=pltpu.PrefetchScalarGridSpec(
            num_scalar_prefetch=0,
            grid=(n_rows,),
            in_specs=[
                pl.BlockSpec((TM, in_pad), lambda i: (i, 0)),     # seq rows
                pl.BlockSpec((in_pad, f_pad), lambda i: (0, 0)),  # W^T resident
            ],
            out_specs=pl.BlockSpec((TM, f_pad), lambda i: (i, 0)),
        ),
        compiler_params=pltpu.CompilerParams(
            dimension_semantics=("parallel",),
        ),
    )(seq_p, wt_p)

    # ---------------- pass 2: adj aggregation + bias + PReLU -----------------
    itemsize = jnp.dtype(compute_dtype).itemsize
    vmem_bytes = (
        2 * TM * TK * itemsize          # adj tiles, double-buffered
        + 2 * N_pad * f_pad * itemsize  # resident seq_fts
        + 2 * f_pad * 4                 # bias
        + 2 * TM * f_pad * 4            # output tile
        + TM * f_pad * 4                # f32 accumulator scratch
    )
    vmem_limit = int(min(64 * 2**20, max(16 * 2**20, int(vmem_bytes * 2))))

    flops = 2 * N_pad * N_pad * f_pad + 2 * N_pad * in_pad * f_pad
    bytes_accessed = (
        N_pad * N_pad * itemsize          # adj streamed once
        + N_pad * f_pad * itemsize        # seq_fts read once
        + N_pad * f_pad * 4               # output written once
    )

    out_p = pl.pallas_call(
        functools.partial(_agg_kernel, tk=TK),
        out_shape=jax.ShapeDtypeStruct((N_pad, f_pad), jnp.float32),
        grid_spec=pltpu.PrefetchScalarGridSpec(
            num_scalar_prefetch=0,
            grid=(n_rows, n_k),
            in_specs=[
                pl.BlockSpec((TM, TK), lambda i, k: (i, k)),        # adj tile (streamed)
                pl.BlockSpec((N_pad, f_pad), lambda i, k: (0, 0)),  # seq_fts (resident)
                pl.BlockSpec((1, f_pad), lambda i, k: (0, 0)),      # bias (resident)
                pl.BlockSpec((1, 1), lambda i, k: (0, 0)),          # alpha (resident)
            ],
            out_specs=pl.BlockSpec((TM, f_pad), lambda i, k: (i, 0)),
            scratch_shapes=[pltpu.VMEM((TM, f_pad), jnp.float32)],
        ),
        compiler_params=pltpu.CompilerParams(
            dimension_semantics=("parallel", "arbitrary"),
            vmem_limit_bytes=vmem_limit,
        ),
        cost_estimate=pl.CostEstimate(
            flops=flops, transcendentals=0, bytes_accessed=bytes_accessed
        ),
    )(adj_p, fts, bias_p, alpha_p)

    # torch.bmm path returns a batched (1, N, out_ft) tensor
    return out_p[None, :N, :out_ft]


def init_params(key, in_ft, out_ft):
    """Deterministic re-implementation of the module's __init__ / weights_init."""
    # nn.Linear weight (out_ft, in_ft) with xavier_uniform_
    bound = (6.0 / (in_ft + out_ft)) ** 0.5
    weight = jax.random.uniform(key, (out_ft, in_ft), jnp.float32, -bound, bound)
    bias = jnp.zeros((out_ft,), jnp.float32)       # bias filled with 0.0
    alpha = jnp.array(0.25, jnp.float32)           # PReLU default single slope
    return weight, bias, alpha


if __name__ == "__main__":
    key = jax.random.PRNGKey(0)
    k_seq, k_adj, k_w = jax.random.split(key, 3)

    N, in_ft, out_ft = 16, 32, 16

    # seq arrives as (1, N, in_ft) -> module squeezes the batch dim
    seq = jax.random.normal(k_seq, (1, N, in_ft), jnp.float32)
    adj = jax.random.uniform(k_adj, (N, N), jnp.float32)
    adj = adj / jnp.sum(adj, axis=-1, keepdims=True)

    weight, bias, alpha = init_params(k_w, in_ft, out_ft)

    out = gcn_forward(seq, adj, weight, bias, alpha)
    jax.block_until_ready(out)

    # reference with matching bf16-input / f32-accumulate quantization
    f32 = jnp.float32
    seq_b = seq[0].astype(jnp.bfloat16).astype(f32)
    wt_b = weight.T.astype(jnp.bfloat16).astype(f32)
    adj_b = adj.astype(jnp.bfloat16).astype(f32)
    fts_ref = (seq_b @ wt_b).astype(jnp.bfloat16).astype(f32)
    h = adj_b @ fts_ref + bias
    ref = jnp.where(h > 0, h, alpha * h)[None]

    assert out.shape == (1, N, out_ft)
    assert jnp.allclose(out, ref, atol=1e-2, rtol=1e-2), float(
        jnp.max(jnp.abs(out - ref)))

    print("KERNEL_OK")
</pallas_src>

<mosaic_0001>
module attributes {stable_mosaic.version = 11 : i64} {
  func.func @_fts_kernel(%arg0: i32, %arg1: memref<128x128xbf16, #tpu.memory_space<vmem>>, %arg2: memref<128x128xbf16, #tpu.memory_space<vmem>>, %arg3: memref<128x128xbf16, #tpu.memory_space<vmem>>) attributes {dimension_semantics = [#tpu.dimension_semantics<parallel>], iteration_bounds = array<i64: 1>, scalar_prefetch = 0 : i64, scratch_operands = 0 : i64, tpu.core_type = #tpu.core_type<tc>, window_params = [{transform_indices = @transform_0, window_bounds = array<i64: 128, 128>}, {pipeline_mode = #tpu.pipeline_mode<synchronous>, transform_indices = @transform_1, window_bounds = array<i64: 128, 128>}, {transform_indices = @transform_2, window_bounds = array<i64: 128, 128>}]} {
    %c0 = arith.constant 0 : index
    %c0_0 = arith.constant 0 : index
    %0 = vector.load %arg1[%c0, %c0_0] : memref<128x128xbf16, #tpu.memory_space<vmem>>, vector<128x128xbf16>
    %c0_1 = arith.constant 0 : index
    %c0_2 = arith.constant 0 : index
    %1 = vector.load %arg2[%c0_1, %c0_2] : memref<128x128xbf16, #tpu.memory_space<vmem>>, vector<128x128xbf16>
    %cst = arith.constant dense<0.000000e+00> : vector<128x128xf32>
    %2 = tpu.matmul %0, %1, %cst {dimension_numbers = #tpu.dot_dimension_numbers<[1], [0], [0], [1], [0, 0, 1, 1], [], []>} : vector<128x128xbf16>, vector<128x128xbf16>, vector<128x128xf32> -> vector<128x128xf32>
    %3 = arith.truncf %2 : vector<128x128xf32> to vector<128x128xbf16>
    %c0_3 = arith.constant 0 : index
    %c0_4 = arith.constant 0 : index
    %4 = vector.load %arg3[%c0_3, %c0_4] : memref<128x128xbf16, #tpu.memory_space<vmem>>, vector<128x128xbf16>
    tpu.vector_store %arg3[%c0_3, %c0_4], %3 {strides = array<i32>} : memref<128x128xbf16, #tpu.memory_space<vmem>>, vector<128x128xbf16>,
    return
  }
  func.func @transform_0(%arg0: i32) -> (i32, i32) {
    %c0_i32 = arith.constant 0 : i32
    %c0_i32_0 = arith.constant 0 : i32
    return %arg0, %c0_i32 : i32, i32
  }
  func.func @transform_1(%arg0: i32) -> (i32, i32) {
    %c0_i32 = arith.constant 0 : i32
    %c0_i32_0 = arith.constant 0 : i32
    %c0_i32_1 = arith.constant 0 : i32
    return %c0_i32, %c0_i32_0 : i32, i32
  }
  func.func @transform_2(%arg0: i32) -> (i32, i32) {
    %c0_i32 = arith.constant 0 : i32
    %c0_i32_0 = arith.constant 0 : i32
    return %arg0, %c0_i32 : i32, i32
  }
}

</mosaic_0001>

<bundles_post_ra>
// kernel: tpu_custom_call.1
= control target key start
LH: loop header
LB: loop body
LE: loop exit
PB: predicated region body
PF: predicated region fallthrough
CT: control target
= control target key end

     0   :  { %7 = vsyncpa [#allocation3], 0  ;;  %s648_s0 = inlined_call_operand.hbm [shape: bf16[128,128], index: 0, kind: input, shape index: {}]   ;;  %s649_s1 = inlined_call_operand.hbm [shape: bf16[128,128], index: 1, kind: input, shape index: {}]   ;;  %s650_s2 = inlined_call_operand.hbm [shape: bf16[128,128], index: 2, kind: output, shape index: {}]  }
   0x1   :  { %8 = vsyncpa [#allocation6], 0 }
   0x2   :  { %9 = vsyncpa [#allocation4], 0  ;;  %s610_s9 = smov [#allocation2]  }
   0x3   :  { %s15_s10 = sshll.u32 %s610_s9, 4  ;;  %s16_s10 = int_to_ptr.vmem [resolvable:$true] %s15_s10 }
   0x4   :  { %s552_s11 = scalar_lea.vmem %s16_s10, 1024  ;;  %p557_p1 = scmp.lt.s32.totalorder %s16_s10, %s16_s10 }
   0x5   :  { %p553_p0 = scmp.ne.s32.totalorder %s16_s10, %s552_s11  ;;  %p558_p2 = scmp.lt.s32.totalorder %s552_s11, %s552_s11 }
   0x7   :  { %p559_p3 = por %p558_p2, %p557_p1 }
   0x9   :  { %p560_p4 = pnand %p559_p3, %p553_p0 }
   0xb   :  { %563 = shalt.err (!%p560_p4)
}
   0xc   :  { %s611_s12 = smov 64   ;;  %s612_s13 = smov 4  }
   0xd   :  { %21 = dma.hbm_to_vmem [thread:$0]  %s648_s0, 1024, %s16_s10, [#allocation3], %s611_s12, %s611_s12, %s612_s13  }
   0xe   :  { %s613_s16 = smov [#allocation5]  }
   0xf   :  { %s27_s17 = sshll.u32 %s613_s16, 4  ;;  %s28_s17 = int_to_ptr.vmem [resolvable:$true] %s27_s17 }
  0x10   :  { %s572_s18 = scalar_lea.vmem %s28_s17, 1024  ;;  %p577_p6 = scmp.lt.s32.totalorder %s28_s17, %s28_s17 }
  0x11   :  { %p573_p5 = scmp.ne.s32.totalorder %s28_s17, %s572_s18  ;;  %p578_p7 = scmp.lt.s32.totalorder %s572_s18, %s572_s18 }
  0x13   :  { %p579_p8 = por %p578_p7, %p577_p6 }
  0x15   :  { %p580_p9 = pnand %p579_p8, %p573_p5 }
  0x17   :  { %583 = shalt.err (!%p580_p9)
}
  0x18   :  { %33 = dma.hbm_to_vmem [thread:$0]  %s649_s1, 1024, %s28_s17, [#allocation6], %s611_s12, %s611_s12, %s612_s13  }
  0x19   :  { %604 = dma.done.wait [#allocation3], 1024  }
  0x1a   :  { %605 = vsyncadd [#allocation3], 4294966272 }
  0x1b   :  { %606 = dma.done.wait [#allocation6], 1024  }
  0x1c   :  { %607 = vsyncadd [#allocation6], 4294966272  ;;  %v528_v0 = vld [vmem:[#allocation5 + $0x38] sm:$0xff]   ;;  %v529_v1 = vld [vmem:[#allocation5 + $0x30] sm:$0xff]   ;;  %s614_s0 = smov [#allocation7]  }
  0x1d   :  { %475 = vmatprep.subr.bf16.mxu0 %v528_v0  ;;  %507 = vmatprep.subr.bf16.mxu1 %v528_v0  ;;  %v530_v2 = vld [vmem:[#allocation5 + $0x28] sm:$0xff]   ;;  %v531_v3 = vld [vmem:[#allocation5 + $0x20] sm:$0xff]   ;;  %v532_v6 = vld [vmem:[#allocation5 + $0x18] sm:$0xff]   ;;  %s351_s1 = sshll.u32 %s614_s0, 4  ;;  %s352_s1 = int_to_ptr.vmem [resolvable:$true] %s351_s1 }
  0x1e   :  { %476 = vmatpush3.bf16.msra.mxu0 %v528_v0  ;;  %515 = vmatpush3.bf16.msra.mxu1 %v528_v0  ;;  %v536_v4 = vld [vmem:[#allocation2] sm:$0xff]   ;;  %v533_v7 = vld [vmem:[#allocation5 + $0x10] sm:$0xff]   ;;  %v534_v8 = vld [vmem:[#allocation5 + $0x8] sm:$0xff]   ;;  %s584_s21 = scalar_lea.vmem %s352_s1, 1024  ;;  %p589_p11 = scmp.lt.s32.totalorder %s352_s1, %s352_s1 }
  0x1f   :  { %477 = vmatprep.subr.bf16.mxu0 %v529_v1  ;;  %508 = vmatprep.subr.bf16.mxu1 %v529_v1  ;;  %v537_v5 = vld [vmem:[#allocation2 + $0x20] sm:$0xff]   ;;  %v538_v10 = vld [vmem:[#allocation2 + $0x8] sm:$0xff]   ;;  %v540_v12 = vld [vmem:[#allocation2 + $0x10] sm:$0xff]   ;;  %p585_p10 = scmp.ne.s32.totalorder %s352_s1, %s584_s21  ;;  %p590_p12 = scmp.lt.s32.totalorder %s584_s21, %s584_s21 }
  0x20   :  { %491 = vmatprep.mubr.bf16.mxu0 %v536_v4  ;;  %499 = vmatprep.mubr.bf16.mxu1 %v537_v5  ;;  %v535_v9 = vld [vmem:[#allocation5] sm:$0xff]   ;;  %v539_v11 = vld [vmem:[#allocation2 + $0x28] sm:$0xff]   ;;  %v541_v13 = vld [vmem:[#allocation2 + $0x30] sm:$0xff]  }
  0x21   :  { %v542_v14 = vld [vmem:[#allocation2 + $0x18] sm:$0xff]   ;;  %p591_p13 = por %p590_p12, %p589_p11 }
  0x22   :  { %478 = vmatpush3.bf16.msra.mxu0 %v529_v1  ;;  %516 = vmatpush3.bf16.msra.mxu1 %v529_v1  ;;  %v543_v15 = vld [vmem:[#allocation2 + $0x38] sm:$0xff]  }
  0x23   :  { %479 = vmatprep.subr.bf16.mxu0 %v530_v2  ;;  %509 = vmatprep.subr.bf16.mxu1 %v530_v2  ;;  %p592_p0 = pnand %p591_p13, %p585_p10 }
  0x26   :  { %480 = vmatpush3.bf16.msra.mxu0 %v530_v2  ;;  %517 = vmatpush3.bf16.msra.mxu1 %v530_v2 }
  0x27   :  { %481 = vmatprep.subr.bf16.mxu0 %v531_v3  ;;  %510 = vmatprep.subr.bf16.mxu1 %v531_v3 }
  0x2a   :  { %482 = vmatpush3.bf16.msra.mxu0 %v531_v3  ;;  %518 = vmatpush3.bf16.msra.mxu1 %v531_v3 }
  0x2b   :  { %483 = vmatprep.subr.bf16.mxu0 %v532_v6  ;;  %511 = vmatprep.subr.bf16.mxu1 %v532_v6 }
  0x2e   :  { %484 = vmatpush3.bf16.msra.mxu0 %v532_v6  ;;  %519 = vmatpush3.bf16.msra.mxu1 %v532_v6 }
  0x2f   :  { %485 = vmatprep.subr.bf16.mxu0 %v533_v7  ;;  %512 = vmatprep.subr.bf16.mxu1 %v533_v7 }
  0x32   :  { %486 = vmatpush3.bf16.msra.mxu0 %v533_v7  ;;  %520 = vmatpush3.bf16.msra.mxu1 %v533_v7 }
  0x33   :  { %487 = vmatprep.subr.bf16.mxu0 %v534_v8  ;;  %513 = vmatprep.subr.bf16.mxu1 %v534_v8 }
  0x36   :  { %488 = vmatpush3.bf16.msra.mxu0 %v534_v8  ;;  %521 = vmatpush3.bf16.msra.mxu1 %v534_v8 }
  0x37   :  { %489 = vmatprep.subr.bf16.mxu0 %v535_v9  ;;  %514 = vmatprep.subr.bf16.mxu1 %v535_v9 }
  0x3a   :  { %490 = vmatpush3.bf16.msra.mxu0 %v535_v9  ;;  %522 = vmatpush3.bf16.msra.mxu1 %v535_v9 }
  0x3d   :  { %492 = vmatmul.mubr.bf16.vlgmr.msra.gmra.mxu0 %v538_v10  ;;  %500 = vmatmul.mubr.bf16.vlgmr.msra.gmra.mxu1 %v539_v11 }
  0x3e   :  { %495 = vmatprep.mubr.bf16.mxu0 %v540_v12  ;;  %503 = vmatprep.mubr.bf16.mxu1 %v541_v13 }
  0x45   :  { %496 = vmatmul.mubr.bf16.gmra.mxu0 %v542_v14  ;;  %504 = vmatmul.mubr.bf16.gmra.mxu1 %v543_v15 }
  0xfd   :  { %v493_v16 = vpop.f32.mrf.mxu0  ;;  %v501_v17 = vpop.f32.mrf.mxu1 }
  0xff   :  { %v203_v18 = vpop.f32.mrf.mxu0  ;;  %v235_v19 = vpop.f32.mrf.mxu1 }
 0x101   :  { %v494_v20 = vpop.f32.mrf.mxu0  ;;  %v502_v21 = vpop.f32.mrf.mxu1 }
 0x102   :  { %v420_v22 = vpack.c.bf16 %v494_v20, %v493_v16  ;;  %v440_v23 = vpack.c.bf16 %v502_v21, %v501_v17 }
 0x103   :  { %v206_v24 = vpop.f32.mrf.mxu0  ;;  %v238_v25 = vpop.f32.mrf.mxu1 }
 0x104   :  { %452 = vst [vmem:[#allocation7 + $0x8] sm:$0xff] %v420_v22   ;;  %456 = vst [vmem:[#allocation7 + $0x28] sm:$0xff] %v440_v23   ;;  %v415_v26 = vpack.c.bf16 %v206_v24, %v203_v18  ;;  %v435_v27 = vpack.c.bf16 %v238_v25, %v235_v19 }
 0x105   :  { %v497_v28 = vpop.f32.mrf.mxu0  ;;  %v505_v29 = vpop.f32.mrf.mxu1 }
 0x106   :  { %416 = vst [vmem:[#allocation7] sm:$0xff] %v415_v26   ;;  %455 = vst [vmem:[#allocation7 + $0x20] sm:$0xff] %v435_v27  }
 0x107   :  { %v219_v30 = vpop.f32.mrf.mxu0  ;;  %v251_v31 = vpop.f32.mrf.mxu1 }
 0x109   :  { %v498_v32 = vpop.f32.mrf.mxu0  ;;  %v506_v33 = vpop.f32.mrf.mxu1 }
 0x10a   :  { %v430_v34 = vpack.c.bf16 %v498_v32, %v497_v28  ;;  %v450_v35 = vpack.c.bf16 %v506_v33, %v505_v29 }
 0x10b   :  { %v222_v36 = vpop.f32.mrf.mxu0  ;;  %v254_v37 = vpop.f32.mrf.mxu1 }
 0x10c   :  { %454 = vst [vmem:[#allocation7 + $0x18] sm:$0xff] %v430_v34   ;;  %458 = vst [vmem:[#allocation7 + $0x38] sm:$0xff] %v450_v35   ;;  %v425_v38 = vpack.c.bf16 %v222_v36, %v219_v30  ;;  %v445_v39 = vpack.c.bf16 %v254_v37, %v251_v31 }
 0x10e   :  { %453 = vst [vmem:[#allocation7 + $0x10] sm:$0xff] %v425_v38   ;;  %457 = vst [vmem:[#allocation7 + $0x30] sm:$0xff] %v445_v39  }
 0x10f   :  { %595 = shalt.err (!%p592_p0)
}
 0x110   :  { %357 = dma.vmem_to_hbm [thread:$0]  %s352_s1, 1024, %s650_s2, [#allocation4], %s611_s12, %s611_s12, %s612_s13  }
 0x111   :  { %608 = dma.done.wait [#allocation4], 1024  }
 0x112   :  { %609 = vsyncadd [#allocation4], 4294966272 }
 0x113   :  { %361 = vsyncpa [#allocation3], 1 }
 0x114   :  { %362 = vsyncpa [#allocation6], 1 }
 0x115   :  { %363 = vsyncpa [#allocation4], 1 }

</bundles_post_ra>
